<compile_context>
chip_gen: v7x
topology: tpu7x:2x2x1
jax: 0.10.0
libtpu: 0.0.40
codegen_flags: <defaults>
</compile_context>

<pallas_src>
import functools
import math

import jax
import jax.numpy as jnp
from jax.experimental import pallas as pl
from jax.experimental.pallas import tpu as pltpu


def _layer_norm(x, gamma, beta, eps):
    mu = jnp.mean(x, axis=-1, keepdims=True)
    var = jnp.mean((x - mu) ** 2, axis=-1, keepdims=True)
    return (x - mu) * jax.lax.rsqrt(var + eps) * gamma + beta


def encoder_layer_kernel(x_ref,
                         wqkv_ref, bqkv_ref, wo_ref, bo_ref,
                         w1_ref, b1_ref, w2_ref, b2_ref,
                         g1_ref, be1_ref, g2_ref, be2_ref,
                         o_ref,
                         *, num_heads, head_dim, eps, norm_first):
    S, E = x_ref.shape                            # batch dim squeezed away by BlockSpec
    x = x_ref[...].astype(jnp.float32)            # residual stream kept in f32
    scale = 1.0 / math.sqrt(head_dim)
    mm_dtype = wqkv_ref.dtype                     # bf16 MXU operands

    def self_attention_block(h_in):
        # Fused QKV projection: one wide (E, 3E) MXU matmul, f32 accumulation.
        qkv = jnp.dot(h_in.astype(mm_dtype), wqkv_ref[...],
                      preferred_element_type=jnp.float32) + bqkv_ref[...]
        q, k, v = qkv[:, :E], qkv[:, E:2 * E], qkv[:, 2 * E:]

        # (S, E) -> (H, S, D): one relayout per tensor, then batched head contractions.
        def heads(t):
            return jnp.transpose(t.reshape(S, num_heads, head_dim),
                                 (1, 0, 2)).astype(mm_dtype)

        qh, kh, vh = heads(q), heads(k), heads(v)
        s = jnp.einsum('hqd,hkd->hqk', qh, kh,
                       preferred_element_type=jnp.float32) * scale
        # TODO(synk): additive src_mask / key_padding_mask support (forward uses None).
        s = s - jnp.max(s, axis=-1, keepdims=True)
        p = jnp.exp(s)
        p = p * pl.reciprocal(jnp.sum(p, axis=-1, keepdims=True), approx=True)
        ctx = jnp.einsum('hqk,hkd->hqd', p.astype(mm_dtype), vh,
                         preferred_element_type=jnp.float32)     # (H, S, D)
        ctx = jnp.transpose(ctx, (1, 0, 2)).reshape(S, E)        # (S, E)
        # dropout1 is identity in eval mode.
        return jnp.dot(ctx.astype(mm_dtype), wo_ref[...],
                       preferred_element_type=jnp.float32) + bo_ref[...]

    def feedforward_block(h_in):
        h = jnp.dot(h_in.astype(mm_dtype), w1_ref[...],
                    preferred_element_type=jnp.float32) + b1_ref[...]
        h = jnp.maximum(h, 0.0)                   # ReLU; dropout / dropout2 = identity
        return jnp.dot(h.astype(mm_dtype), w2_ref[...],
                       preferred_element_type=jnp.float32) + b2_ref[...]

    g1, be1 = g1_ref[...], be1_ref[...]
    g2, be2 = g2_ref[...], be2_ref[...]

    if norm_first:
        x = x + self_attention_block(_layer_norm(x, g1, be1, eps))
        x = x + feedforward_block(_layer_norm(x, g2, be2, eps))
    else:
        x = _layer_norm(x + self_attention_block(x), g1, be1, eps)
        x = _layer_norm(x + feedforward_block(x), g2, be2, eps)

    o_ref[...] = x.astype(o_ref.dtype)


def transformer_encoder_layer(src, params, *, num_heads, eps=1e-5, norm_first=True,
                              matmul_dtype=jnp.bfloat16):
    N, S, E = src.shape
    head_dim = E // num_heads

    # Host-side QKV fusion + bf16 weight casting (halves resident weight VMEM and
    # feeds the MXU with its native operand dtype). Biases / norm params stay f32
    # because they are added to the f32 accumulators / residual stream.
    wqkv = jnp.concatenate([params["wq"], params["wk"], params["wv"]],
                           axis=1).astype(matmul_dtype)
    bqkv = jnp.concatenate([params["bq"], params["bk"], params["bv"]],
                           axis=1).astype(jnp.float32)

    weights = [
        wqkv, bqkv,
        params["wo"].astype(matmul_dtype), params["bo"].astype(jnp.float32),
        params["w1"].astype(matmul_dtype), params["b1"].astype(jnp.float32),
        params["w2"].astype(matmul_dtype), params["b2"].astype(jnp.float32),
        params["g1"].astype(jnp.float32), params["be1"].astype(jnp.float32),
        params["g2"].astype(jnp.float32), params["be2"].astype(jnp.float32),
    ]

    def full_spec(arr):
        ndim = arr.ndim
        # Constant block index across the batch grid -> no re-fetch between steps.
        return pl.BlockSpec(arr.shape, lambda b, _n=ndim: (0,) * _n)

    kernel = functools.partial(encoder_layer_kernel,
                               num_heads=num_heads, head_dim=head_dim,
                               eps=eps, norm_first=norm_first)

    return pl.pallas_call(
        kernel,
        out_shape=jax.ShapeDtypeStruct((N, S, E), src.dtype),
        grid_spec=pltpu.PrefetchScalarGridSpec(
            num_scalar_prefetch=0,
            grid=(N,),
            in_specs=[pl.BlockSpec((pl.Squeezed(), S, E), lambda b: (b, 0, 0))]
                     + [full_spec(a) for a in weights],
            out_specs=pl.BlockSpec((pl.Squeezed(), S, E), lambda b: (b, 0, 0)),
        ),
        compiler_params=pltpu.CompilerParams(
            dimension_semantics=("parallel",),
            # Above the 16/32 MiB scoped defaults, below every chip's physical VMEM.
            vmem_limit_bytes=48 * 1024 * 1024,
        ),
    )(src, *weights)


def _reference(src, p, *, num_heads, eps=1e-5, norm_first=True):
    # Pure-JAX f32 reference for a correctness check.
    N, S, E = src.shape
    D = E // num_heads

    def ln(x, g, b):
        mu = x.mean(-1, keepdims=True)
        var = ((x - mu) ** 2).mean(-1, keepdims=True)
        return (x - mu) / jnp.sqrt(var + eps) * g + b

    def attn(x):
        q = x @ p["wq"] + p["bq"]
        k = x @ p["wk"] + p["bk"]
        v = x @ p["wv"] + p["bv"]
        q = q.reshape(N, S, num_heads, D).transpose(0, 2, 1, 3)
        k = k.reshape(N, S, num_heads, D).transpose(0, 2, 1, 3)
        v = v.reshape(N, S, num_heads, D).transpose(0, 2, 1, 3)
        s = jnp.einsum("bhqd,bhkd->bhqk", q, k) / math.sqrt(D)
        pr = jax.nn.softmax(s, axis=-1)
        o = jnp.einsum("bhqk,bhkd->bhqd", pr, v).transpose(0, 2, 1, 3).reshape(N, S, E)
        return o @ p["wo"] + p["bo"]

    def ffn(x):
        return jnp.maximum(x @ p["w1"] + p["b1"], 0.0) @ p["w2"] + p["b2"]

    x = src
    if norm_first:
        x = x + attn(ln(x, p["g1"], p["be1"]))
        x = x + ffn(ln(x, p["g2"], p["be2"]))
    else:
        x = ln(x + attn(x), p["g1"], p["be1"])
        x = ln(x + ffn(x), p["g2"], p["be2"])
    return x


if __name__ == "__main__":
    N, S, E, H, F = 2, 8, 32, 4, 64
    key = jax.random.PRNGKey(0)
    keys = jax.random.split(key, 12)

    def init(k, shape, scale=0.1):
        return (scale * jax.random.normal(k, shape)).astype(jnp.float32)

    # Biases / norm params kept as (1, dim) for TPU-friendly 2-D layouts.
    params = dict(
        wq=init(keys[0], (E, E)),  bq=init(keys[1], (1, E)),
        wk=init(keys[2], (E, E)),  bk=init(keys[3], (1, E)),
        wv=init(keys[4], (E, E)),  bv=init(keys[5], (1, E)),
        wo=init(keys[6], (E, E)),  bo=init(keys[7], (1, E)),
        w1=init(keys[8], (E, F)),  b1=init(keys[9], (1, F)),
        w2=init(keys[10], (F, E)), b2=init(keys[11], (1, E)),
        g1=jnp.ones((1, E), jnp.float32),  be1=jnp.zeros((1, E), jnp.float32),
        g2=jnp.ones((1, E), jnp.float32),  be2=jnp.zeros((1, E), jnp.float32),
    )

    src = jax.random.normal(jax.random.PRNGKey(42), (N, S, E), dtype=jnp.float32)

    # norm_first = True (pre-LN)
    out = transformer_encoder_layer(src, params, num_heads=H, norm_first=True)
    out = jax.block_until_ready(out)
    ref = _reference(src, params, num_heads=H, norm_first=True)
    assert out.shape == (N, S, E)
    # bf16 matmul operands vs f32 reference -> loosened tolerance.
    assert jnp.allclose(out, ref, atol=3e-2, rtol=3e-2), "mismatch (norm_first=True)"

    # norm_first = False (post-LN)
    out2 = transformer_encoder_layer(src, params, num_heads=H, norm_first=False)
    out2 = jax.block_until_ready(out2)
    ref2 = _reference(src, params, num_heads=H, norm_first=False)
    assert jnp.allclose(out2, ref2, atol=3e-2, rtol=3e-2), "mismatch (norm_first=False)"

    print("KERNEL_OK")
</pallas_src>

<mosaic_0001>
module attributes {stable_mosaic.version = 11 : i64} {
  func.func @encoder_layer_kernel(%arg0: i32, %arg1: memref<1x8x32xf32, #tpu.memory_space<vmem>>, %arg2: memref<32x96xbf16, #tpu.memory_space<vmem>>, %arg3: memref<1x96xf32, #tpu.memory_space<vmem>>, %arg4: memref<32x32xbf16, #tpu.memory_space<vmem>>, %arg5: memref<1x32xf32, #tpu.memory_space<vmem>>, %arg6: memref<32x64xbf16, #tpu.memory_space<vmem>>, %arg7: memref<1x64xf32, #tpu.memory_space<vmem>>, %arg8: memref<64x32xbf16, #tpu.memory_space<vmem>>, %arg9: memref<1x32xf32, #tpu.memory_space<vmem>>, %arg10: memref<1x32xf32, #tpu.memory_space<vmem>>, %arg11: memref<1x32xf32, #tpu.memory_space<vmem>>, %arg12: memref<1x32xf32, #tpu.memory_space<vmem>>, %arg13: memref<1x32xf32, #tpu.memory_space<vmem>>, %arg14: memref<1x8x32xf32, #tpu.memory_space<vmem>>) attributes {dimension_semantics = [#tpu.dimension_semantics<parallel>], iteration_bounds = array<i64: 2>, scalar_prefetch = 0 : i64, scratch_operands = 0 : i64, tpu.core_type = #tpu.core_type<tc>, window_params = [{transform_indices = @transform_0, window_bounds = array<i64: 1, 8, 32>}, {pipeline_mode = #tpu.pipeline_mode<synchronous>, transform_indices = @transform_1, window_bounds = array<i64: 32, 96>}, {pipeline_mode = #tpu.pipeline_mode<synchronous>, transform_indices = @transform_2, window_bounds = array<i64: 1, 96>}, {pipeline_mode = #tpu.pipeline_mode<synchronous>, transform_indices = @transform_3, window_bounds = array<i64: 32, 32>}, {pipeline_mode = #tpu.pipeline_mode<synchronous>, transform_indices = @transform_4, window_bounds = array<i64: 1, 32>}, {pipeline_mode = #tpu.pipeline_mode<synchronous>, transform_indices = @transform_5, window_bounds = array<i64: 32, 64>}, {pipeline_mode = #tpu.pipeline_mode<synchronous>, transform_indices = @transform_6, window_bounds = array<i64: 1, 64>}, {pipeline_mode = #tpu.pipeline_mode<synchronous>, transform_indices = @transform_7, window_bounds = array<i64: 64, 32>}, {pipeline_mode = #tpu.pipeline_mode<synchronous>, transform_indices = @transform_8, window_bounds = array<i64: 1, 32>}, {pipeline_mode = #tpu.pipeline_mode<synchronous>, transform_indices = @transform_9, window_bounds = array<i64: 1, 32>}, {pipeline_mode = #tpu.pipeline_mode<synchronous>, transform_indices = @transform_10, window_bounds = array<i64: 1, 32>}, {pipeline_mode = #tpu.pipeline_mode<synchronous>, transform_indices = @transform_11, window_bounds = array<i64: 1, 32>}, {pipeline_mode = #tpu.pipeline_mode<synchronous>, transform_indices = @transform_12, window_bounds = array<i64: 1, 32>}, {transform_indices = @transform_13, window_bounds = array<i64: 1, 8, 32>}]} {
    %c0 = arith.constant 0 : index
    %c0_0 = arith.constant 0 : index
    %c0_1 = arith.constant 0 : index
    %0 = vector.load %arg1[%c0, %c0_0, %c0_1] : memref<1x8x32xf32, #tpu.memory_space<vmem>>, vector<1x8x32xf32>
    %1 = vector.shape_cast %0 : vector<1x8x32xf32> to vector<8x32xf32>
    %c0_2 = arith.constant 0 : index
    %c0_3 = arith.constant 0 : index
    %2 = vector.load %arg10[%c0_2, %c0_3] : memref<1x32xf32, #tpu.memory_space<vmem>>, vector<1x32xf32>
    %c0_4 = arith.constant 0 : index
    %c0_5 = arith.constant 0 : index
    %3 = vector.load %arg11[%c0_4, %c0_5] : memref<1x32xf32, #tpu.memory_space<vmem>>, vector<1x32xf32>
    %c0_6 = arith.constant 0 : index
    %c0_7 = arith.constant 0 : index
    %4 = vector.load %arg12[%c0_6, %c0_7] : memref<1x32xf32, #tpu.memory_space<vmem>>, vector<1x32xf32>
    %c0_8 = arith.constant 0 : index
    %c0_9 = arith.constant 0 : index
    %5 = vector.load %arg13[%c0_8, %c0_9] : memref<1x32xf32, #tpu.memory_space<vmem>>, vector<1x32xf32>
    %cst = arith.constant dense<0.000000e+00> : vector<8xf32>
    %6 = vector.multi_reduction <add>, %1, %cst [1] : vector<8x32xf32> to vector<8xf32>
    %7 = vector.shape_cast %6 : vector<8xf32> to vector<8x1xf32>
    %cst_10 = arith.constant 3.200000e+01 : f32
    %8 = vector.broadcast %cst_10 : f32 to vector<8x1xf32>
    %9 = arith.divf %7, %8 : vector<8x1xf32>
    %10 = vector.broadcast %9 : vector<8x1xf32> to vector<8x32xf32>
    %11 = arith.subf %1, %10 : vector<8x32xf32>
    %12 = arith.mulf %11, %11 : vector<8x32xf32>
    %cst_11 = arith.constant dense<0.000000e+00> : vector<8xf32>
    %13 = vector.multi_reduction <add>, %12, %cst_11 [1] : vector<8x32xf32> to vector<8xf32>
    %14 = vector.shape_cast %13 : vector<8xf32> to vector<8x1xf32>
    %cst_12 = arith.constant 3.200000e+01 : f32
    %15 = vector.broadcast %cst_12 : f32 to vector<8x1xf32>
    %16 = arith.divf %14, %15 : vector<8x1xf32>
    %17 = vector.broadcast %9 : vector<8x1xf32> to vector<8x32xf32>
    %18 = arith.subf %1, %17 : vector<8x32xf32>
    %cst_13 = arith.constant 9.99999974E-6 : f32
    %19 = vector.broadcast %cst_13 : f32 to vector<8x1xf32>
    %20 = arith.addf %16, %19 : vector<8x1xf32>
    %21 = math.rsqrt %20 : vector<8x1xf32>
    %22 = vector.broadcast %21 : vector<8x1xf32> to vector<8x32xf32>
    %23 = arith.mulf %18, %22 : vector<8x32xf32>
    %24 = vector.broadcast %2 : vector<1x32xf32> to vector<8x32xf32>
    %25 = arith.mulf %23, %24 : vector<8x32xf32>
    %26 = vector.broadcast %3 : vector<1x32xf32> to vector<8x32xf32>
    %27 = arith.addf %25, %26 : vector<8x32xf32>
    %28 = arith.truncf %27 : vector<8x32xf32> to vector<8x32xbf16>
    %c0_14 = arith.constant 0 : index
    %c0_15 = arith.constant 0 : index
    %29 = vector.load %arg2[%c0_14, %c0_15] : memref<32x96xbf16, #tpu.memory_space<vmem>>, vector<32x96xbf16>
    %cst_16 = arith.constant dense<0.000000e+00> : vector<8x96xf32>
    %30 = tpu.matmul %28, %29, %cst_16 {dimension_numbers = #tpu.dot_dimension_numbers<[1], [0], [0], [1], [0, 0, 1, 1], [], []>} : vector<8x32xbf16>, vector<32x96xbf16>, vector<8x96xf32> -> vector<8x96xf32>
    %c0_17 = arith.constant 0 : index
    %c0_18 = arith.constant 0 : index
    %31 = vector.load %arg3[%c0_17, %c0_18] : memref<1x96xf32, #tpu.memory_space<vmem>>, vector<1x96xf32>
    %32 = vector.broadcast %31 : vector<1x96xf32> to vector<8x96xf32>
    %33 = arith.addf %30, %32 : vector<8x96xf32>
    %34 = vector.extract_strided_slice %33 {offsets = [0, 0], sizes = [8, 32], strides = [1, 1]} : vector<8x96xf32> to vector<8x32xf32>
    %35 = vector.extract_strided_slice %33 {offsets = [0, 32], sizes = [8, 32], strides = [1, 1]} : vector<8x96xf32> to vector<8x32xf32>
    %36 = vector.extract_strided_slice %33 {offsets = [0, 64], sizes = [8, 32], strides = [1, 1]} : vector<8x96xf32> to vector<8x32xf32>
    %37 = vector.shape_cast %34 : vector<8x32xf32> to vector<8x4x8xf32>
    %38 = tpu.transpose %37, [1, 0, 2] : vector<8x4x8xf32> -> vector<4x8x8xf32>
    %39 = arith.truncf %38 : vector<4x8x8xf32> to vector<4x8x8xbf16>
    %40 = vector.shape_cast %35 : vector<8x32xf32> to vector<8x4x8xf32>
    %41 = tpu.transpose %40, [1, 0, 2] : vector<8x4x8xf32> -> vector<4x8x8xf32>
    %42 = arith.truncf %41 : vector<4x8x8xf32> to vector<4x8x8xbf16>
    %43 = vector.shape_cast %36 : vector<8x32xf32> to vector<8x4x8xf32>
    %44 = tpu.transpose %43, [1, 0, 2] : vector<8x4x8xf32> -> vector<4x8x8xf32>
    %45 = arith.truncf %44 : vector<4x8x8xf32> to vector<4x8x8xbf16>
    "tpu.trace_start"() <{level = 10 : i32, message = "hqd,hkd->hqk"}> : () -> ()
    %cst_19 = arith.constant dense<0.000000e+00> : vector<4x8x8xf32>
    %46 = tpu.matmul %39, %42, %cst_19 {dimension_numbers = #tpu.dot_dimension_numbers<[2], [2], [1], [1], [0, 0, 0, 1, 1, 1], [0], [0]>} : vector<4x8x8xbf16>, vector<4x8x8xbf16>, vector<4x8x8xf32> -> vector<4x8x8xf32>
    "tpu.trace_stop"() : () -> ()
    %cst_20 = arith.constant 0.353553385 : f32
    %47 = vector.broadcast %cst_20 : f32 to vector<4x8x8xf32>
    %48 = arith.mulf %46, %47 : vector<4x8x8xf32>
    %cst_21 = arith.constant dense<0xFF800000> : vector<4x8xf32>
    %49 = vector.multi_reduction <maximumf>, %48, %cst_21 [2] : vector<4x8x8xf32> to vector<4x8xf32>
    %50 = vector.shape_cast %49 : vector<4x8xf32> to vector<4x8x1xf32>
    %51 = vector.broadcast %50 : vector<4x8x1xf32> to vector<4x8x8xf32>
    %52 = arith.subf %48, %51 : vector<4x8x8xf32>
    %53 = math.exp %52 : vector<4x8x8xf32>
    %cst_22 = arith.constant dense<0.000000e+00> : vector<4x8xf32>
    %54 = vector.multi_reduction <add>, %53, %cst_22 [2] : vector<4x8x8xf32> to vector<4x8xf32>
    %55 = vector.shape_cast %54 : vector<4x8xf32> to vector<4x8x1xf32>
    %56 = tpu.reciprocal %55 {approx = true} : vector<4x8x1xf32> -> vector<4x8x1xf32>
    %57 = vector.broadcast %56 : vector<4x8x1xf32> to vector<4x8x8xf32>
    %58 = arith.mulf %53, %57 : vector<4x8x8xf32>
    %59 = arith.truncf %58 : vector<4x8x8xf32> to vector<4x8x8xbf16>
    "tpu.trace_start"() <{level = 10 : i32, message = "hqk,hkd->hqd"}> : () -> ()
    %cst_23 = arith.constant dense<0.000000e+00> : vector<4x8x8xf32>
    %60 = tpu.matmul %59, %45, %cst_23 {dimension_numbers = #tpu.dot_dimension_numbers<[2], [1], [1], [2], [0, 0, 0, 1, 1, 2], [0], [0]>} : vector<4x8x8xbf16>, vector<4x8x8xbf16>, vector<4x8x8xf32> -> vector<4x8x8xf32>
    "tpu.trace_stop"() : () -> ()
    %61 = tpu.transpose %60, [1, 0, 2] : vector<4x8x8xf32> -> vector<8x4x8xf32>
    %62 = vector.shape_cast %61 : vector<8x4x8xf32> to vector<8x32xf32>
    %63 = arith.truncf %62 : vector<8x32xf32> to vector<8x32xbf16>
    %c0_24 = arith.constant 0 : index
    %c0_25 = arith.constant 0 : index
    %64 = vector.load %arg4[%c0_24, %c0_25] : memref<32x32xbf16, #tpu.memory_space<vmem>>, vector<32x32xbf16>
    %cst_26 = arith.constant dense<0.000000e+00> : vector<8x32xf32>
    %65 = tpu.matmul %63, %64, %cst_26 {dimension_numbers = #tpu.dot_dimension_numbers<[1], [0], [0], [1], [0, 0, 1, 1], [], []>} : vector<8x32xbf16>, vector<32x32xbf16>, vector<8x32xf32> -> vector<8x32xf32>
    %c0_27 = arith.constant 0 : index
    %c0_28 = arith.constant 0 : index
    %66 = vector.load %arg5[%c0_27, %c0_28] : memref<1x32xf32, #tpu.memory_space<vmem>>, vector<1x32xf32>
    %67 = vector.broadcast %66 : vector<1x32xf32> to vector<8x32xf32>
    %68 = arith.addf %65, %67 : vector<8x32xf32>
    %69 = arith.addf %1, %68 : vector<8x32xf32>
    %cst_29 = arith.constant dense<0.000000e+00> : vector<8xf32>
    %70 = vector.multi_reduction <add>, %69, %cst_29 [1] : vector<8x32xf32> to vector<8xf32>
    %71 = vector.shape_cast %70 : vector<8xf32> to vector<8x1xf32>
    %cst_30 = arith.constant 3.200000e+01 : f32
    %72 = vector.broadcast %cst_30 : f32 to vector<8x1xf32>
    %73 = arith.divf %71, %72 : vector<8x1xf32>
    %74 = vector.broadcast %73 : vector<8x1xf32> to vector<8x32xf32>
    %75 = arith.subf %69, %74 : vector<8x32xf32>
    %76 = arith.mulf %75, %75 : vector<8x32xf32>
    %cst_31 = arith.constant dense<0.000000e+00> : vector<8xf32>
    %77 = vector.multi_reduction <add>, %76, %cst_31 [1] : vector<8x32xf32> to vector<8xf32>
    %78 = vector.shape_cast %77 : vector<8xf32> to vector<8x1xf32>
    %cst_32 = arith.constant 3.200000e+01 : f32
    %79 = vector.broadcast %cst_32 : f32 to vector<8x1xf32>
    %80 = arith.divf %78, %79 : vector<8x1xf32>
    %81 = vector.broadcast %73 : vector<8x1xf32> to vector<8x32xf32>
    %82 = arith.subf %69, %81 : vector<8x32xf32>
    %cst_33 = arith.constant 9.99999974E-6 : f32
    %83 = vector.broadcast %cst_33 : f32 to vector<8x1xf32>
    %84 = arith.addf %80, %83 : vector<8x1xf32>
    %85 = math.rsqrt %84 : vector<8x1xf32>
    %86 = vector.broadcast %85 : vector<8x1xf32> to vector<8x32xf32>
    %87 = arith.mulf %82, %86 : vector<8x32xf32>
    %88 = vector.broadcast %4 : vector<1x32xf32> to vector<8x32xf32>
    %89 = arith.mulf %87, %88 : vector<8x32xf32>
    %90 = vector.broadcast %5 : vector<1x32xf32> to vector<8x32xf32>
    %91 = arith.addf %89, %90 : vector<8x32xf32>
    %92 = arith.truncf %91 : vector<8x32xf32> to vector<8x32xbf16>
    %c0_34 = arith.constant 0 : index
    %c0_35 = arith.constant 0 : index
    %93 = vector.load %arg6[%c0_34, %c0_35] : memref<32x64xbf16, #tpu.memory_space<vmem>>, vector<32x64xbf16>
    %cst_36 = arith.constant dense<0.000000e+00> : vector<8x64xf32>
    %94 = tpu.matmul %92, %93, %cst_36 {dimension_numbers = #tpu.dot_dimension_numbers<[1], [0], [0], [1], [0, 0, 1, 1], [], []>} : vector<8x32xbf16>, vector<32x64xbf16>, vector<8x64xf32> -> vector<8x64xf32>
    %c0_37 = arith.constant 0 : index
    %c0_38 = arith.constant 0 : index
    %95 = vector.load %arg7[%c0_37, %c0_38] : memref<1x64xf32, #tpu.memory_space<vmem>>, vector<1x64xf32>
    %96 = vector.broadcast %95 : vector<1x64xf32> to vector<8x64xf32>
    %97 = arith.addf %94, %96 : vector<8x64xf32>
    %cst_39 = arith.constant 0.000000e+00 : f32
    %98 = vector.broadcast %cst_39 : f32 to vector<8x64xf32>
    %99 = arith.maximumf %97, %98 : vector<8x64xf32>
    %100 = arith.truncf %99 : vector<8x64xf32> to vector<8x64xbf16>
    %c0_40 = arith.constant 0 : index
    %c0_41 = arith.constant 0 : index
    %101 = vector.load %arg8[%c0_40, %c0_41] : memref<64x32xbf16, #tpu.memory_space<vmem>>, vector<64x32xbf16>
    %cst_42 = arith.constant dense<0.000000e+00> : vector<8x32xf32>
    %102 = tpu.matmul %100, %101, %cst_42 {dimension_numbers = #tpu.dot_dimension_numbers<[1], [0], [0], [1], [0, 0, 1, 1], [], []>} : vector<8x64xbf16>, vector<64x32xbf16>, vector<8x32xf32> -> vector<8x32xf32>
    %c0_43 = arith.constant 0 : index
    %c0_44 = arith.constant 0 : index
    %103 = vector.load %arg9[%c0_43, %c0_44] : memref<1x32xf32, #tpu.memory_space<vmem>>, vector<1x32xf32>
    %104 = vector.broadcast %103 : vector<1x32xf32> to vector<8x32xf32>
    %105 = arith.addf %102, %104 : vector<8x32xf32>
    %106 = arith.addf %69, %105 : vector<8x32xf32>
    %c0_45 = arith.constant 0 : index
    %c0_46 = arith.constant 0 : index
    %c0_47 = arith.constant 0 : index
    %107 = vector.load %arg14[%c0_45, %c0_46, %c0_47] : memref<1x8x32xf32, #tpu.memory_space<vmem>>, vector<1x8x32xf32>
    %108 = vector.shape_cast %107 : vector<1x8x32xf32> to vector<8x32xf32>
    %109 = vector.shape_cast %106 : vector<8x32xf32> to vector<1x8x32xf32>
    tpu.vector_store %arg14[%c0_45, %c0_46, %c0_47], %109 {strides = array<i32>} : memref<1x8x32xf32, #tpu.memory_space<vmem>>, vector<1x8x32xf32>,
    return
  }
  func.func @transform_0(%arg0: i32) -> (i32, i32, i32) {
    %c0_i32 = arith.constant 0 : i32
    %c0_i32_0 = arith.constant 0 : i32
    %c0_i32_1 = arith.constant 0 : i32
    return %arg0, %c0_i32, %c0_i32_0 : i32, i32, i32
  }
  func.func @transform_1(%arg0: i32) -> (i32, i32) {
    %c0_i32 = arith.constant 0 : i32
    %c0_i32_0 = arith.constant 0 : i32
    %c0_i32_1 = arith.constant 0 : i32
    return %c0_i32, %c0_i32_0 : i32, i32
  }
  func.func @transform_2(%arg0: i32) -> (i32, i32) {
    %c0_i32 = arith.constant 0 : i32
    %c0_i32_0 = arith.constant 0 : i32
    %c0_i32_1 = arith.constant 0 : i32
    return %c0_i32, %c0_i32_0 : i32, i32
  }
  func.func @transform_3(%arg0: i32) -> (i32, i32) {
    %c0_i32 = arith.constant 0 : i32
    %c0_i32_0 = arith.constant 0 : i32
    %c0_i32_1 = arith.constant 0 : i32
    return %c0_i32, %c0_i32_0 : i32, i32
  }
  func.func @transform_4(%arg0: i32) -> (i32, i32) {
    %c0_i32 = arith.constant 0 : i32
    %c0_i32_0 = arith.constant 0 : i32
    %c0_i32_1 = arith.constant 0 : i32
    return %c0_i32, %c0_i32_0 : i32, i32
  }
  func.func @transform_5(%arg0: i32) -> (i32, i32) {
    %c0_i32 = arith.constant 0 : i32
    %c0_i32_0 = arith.constant 0 : i32
    %c0_i32_1 = arith.constant 0 : i32
    return %c0_i32, %c0_i32_0 : i32, i32
  }
  func.func @transform_6(%arg0: i32) -> (i32, i32) {
    %c0_i32 = arith.constant 0 : i32
    %c0_i32_0 = arith.constant 0 : i32
    %c0_i32_1 = arith.constant 0 : i32
    return %c0_i32, %c0_i32_0 : i32, i32
  }
  func.func @transform_7(%arg0: i32) -> (i32, i32) {
    %c0_i32 = arith.constant 0 : i32
    %c0_i32_0 = arith.constant 0 : i32
    %c0_i32_1 = arith.constant 0 : i32
    return %c0_i32, %c0_i32_0 : i32, i32
  }
  func.func @transform_8(%arg0: i32) -> (i32, i32) {
    %c0_i32 = arith.constant 0 : i32
    %c0_i32_0 = arith.constant 0 : i32
    %c0_i32_1 = arith.constant 0 : i32
    return %c0_i32, %c0_i32_0 : i32, i32
  }
  func.func @transform_9(%arg0: i32) -> (i32, i32) {
    %c0_i32 = arith.constant 0 : i32
    %c0_i32_0 = arith.constant 0 : i32
    %c0_i32_1 = arith.constant 0 : i32
    return %c0_i32, %c0_i32_0 : i32, i32
  }
  func.func @transform_10(%arg0: i32) -> (i32, i32) {
    %c0_i32 = arith.constant 0 : i32
    %c0_i32_0 = arith.constant 0 : i32
    %c0_i32_1 = arith.constant 0 : i32
    return %c0_i32, %c0_i32_0 : i32, i32
  }
  func.func @transform_11(%arg0: i32) -> (i32, i32) {
    %c0_i32 = arith.constant 0 : i32
    %c0_i32_0 = arith.constant 0 : i32
    %c0_i32_1 = arith.constant 0 : i32
    return %c0_i32, %c0_i32_0 : i32, i32
  }
  func.func @transform_12(%arg0: i32) -> (i32, i32) {
    %c0_i32 = arith.constant 0 : i32
    %c0_i32_0 = arith.constant 0 : i32
    %c0_i32_1 = arith.constant 0 : i32
    return %c0_i32, %c0_i32_0 : i32, i32
  }
  func.func @transform_13(%arg0: i32) -> (i32, i32, i32) {
    %c0_i32 = arith.constant 0 : i32
    %c0_i32_0 = arith.constant 0 : i32
    %c0_i32_1 = arith.constant 0 : i32
    return %arg0, %c0_i32, %c0_i32_0 : i32, i32, i32
  }
}

</mosaic_0001>

<bundles_post_ra>
// kernel: tpu_custom_call.1
= control target key start
LH: loop header
LB: loop body
LE: loop exit
PB: predicated region body
PF: predicated region fallthrough
CT: control target
= control target key end

     0   :  { %18 = vsyncpa [#allocation3], 0  ;;  %s2730_s0 = inlined_call_operand.vmem [shape: f32[2,8,32], index: 0, kind: input, shape index: {}]   ;;  %s2731_s1 = inlined_call_operand.vmem [shape: bf16[32,96], index: 1, kind: input, shape index: {}]   ;;  %s2732_s2 = inlined_call_operand.vmem [shape: f32[1,96], index: 2, kind: input, shape index: {}]   ;;  %s2733_s3 = inlined_call_operand.vmem [shape: bf16[32,32], index: 3, kind: input, shape index: {}]   ;;  %s2734_s4 = inlined_call_operand.vmem [shape: f32[1,32], index: 4, kind: input, shape index: {}]   ;;  %s2735_s5 = inlined_call_operand.hbm [shape: bf16[32,64], index: 5, kind: input, shape index: {}]   ;;  %s2736_s6 = inlined_call_operand.vmem [shape: f32[1,64], index: 6, kind: input, shape index: {}]   ;;  %s2737_s7 = inlined_call_operand.vmem [shape: bf16[64,32], index: 7, kind: input, shape index: {}]   ;;  %s2738_s8 = inlined_call_operand.vmem [shape: f32[1,32], index: 8, kind: input, shape index: {}]   ;;  %s2739_s9 = inlined_call_operand.vmem [shape: f32[1,32], index: 9, kind: input, shape index: {}]   ;;  %s2740_s10 = inlined_call_operand.vmem [shape: f32[1,32], index: 10, kind: input, shape index: {}]   ;;  %s2741_s11 = inlined_call_operand.vmem [shape: f32[1,32], index: 11, kind: input, shape index: {}]   ;;  %s2742_s12 = inlined_call_operand.vmem [shape: f32[1,32], index: 12, kind: input, shape index: {}]   ;;  %s2743_s13 = inlined_call_operand.hbm [shape: f32[2,8,32], index: 13, kind: output, shape index: {}]  }
   0x1   :  { %19 = vsyncpa [#allocation4], 0 }
   0x2   :  { %21 = vsyncpa [#allocation4 + $0x1], 0  ;;  %s2356_s25 = smov 0   ;;  %s2358_s26 = smov 0  }
   0x3   :  { %s2360_s27 = smov 0   ;;  %s2362_s28 = smov 0  }
   0x4 LB: > { %2750 = sst [smem:[#allocation8_spill]] %s2264_s27  ;;  %s2377_s29 = sadd.s32 4294967295, %s2268_s28   ;;  %s2268_s28 = sphi %s2362_s28, %s2762_s28   ;;  %s2264_s27 = sphi %s2360_s27, %s2764_s27   ;;  %s2260_s26 = sphi %s2358_s26, %s2766_s26   ;;  %s2256_s25 = sphi %s2356_s25, %s2765_s25  }
   0x5   : > { %s1916_s30 = sadd.s32 4294967294, %s2268_s28   ;;  %s2381_s14 = sadd.s32 1, %s2268_s28  }
   0x6   : > { %2751 = sst [smem:[#allocation9_spill]] %s2381_s14  ;;  %s312_s15 = sadd.s32 1, %s2264_s27 }
   0x7   : > { %s309_s16 = ssub.s32 %s2268_s28, %s2381_s14  ;;  %p322_p0 = scmp.ne.s32.totalorder %s2264_s27, %s2260_s26 }
   0x8   : > { %p310_p1 = scmp.eq.s32.totalorder %s309_s16, 0  ;;  %p323_p2 = scmp.eq.s32.totalorder %s2377_s29, 1 }
   0x9   : > { %p328_p3 = scmp.ne.s32.totalorder %s2260_s26, %s2256_s25  ;;  %p329_p4 = scmp.eq.s32.totalorder %s1916_s30, 1 }
   0xa   : > { %s2392_s17 = scalar_select %p310_p1, %s2264_s27, %s312_s15  }
   0xb   : > { %p2394_p5 = por %p323_p2, %p322_p0  ;;  %p2398_p6 = por %p329_p4, %p328_p3 }
   0xc   : > { %2752 = sst [smem:[#allocation10_spill]] %s2392_s17  ;;  %p1917_p7 = scmp.ge.s32.totalorder %s2268_s28, 1 }
   0xd   : > { %s2753_s18 = scalar_select %p2394_p5, 1, 0 }
   0xe   : > { %s2754_s19 = scalar_select %p2398_p6, 1, 0 }
   0xf   : > { %p336_p8 = scmp.lt.s32.totalorder %s2268_s28, 3  ;;  %p2747_p9 = scmp.eq.s32.totalorder %s2377_s29, 0 }
  0x10   : > { %s2270_s21 = smov [#allocation2]   ;;  %s2174_s15 = scalar_lea.hbm %s2735_s5, 256 }
  0x11   : > { %p2405_p10 = pnand %p1917_p7, %p336_p8  ;;  %s360_s22 = sshll.u32 %s2270_s21, 4  ;;  %s361_s22 = int_to_ptr.vmem [resolvable:$true] %s360_s22 }
  0x12   : > { %p2175_p13 = scmp.ne.s32.totalorder %s2735_s5, %s2174_s15  ;;  %p2181_p3 = scmp.lt.u32.totalorder %s2174_s15, %s2735_s5 }
  0x13   : > { %s2755_s20 = scalar_select %p2405_p10, 1, 0 }
  0x14   : > { %p2086_p11 = pneg %p2405_p10 }
  0x16   : > { %p2413_p12 = pnand %p2747_p9, %p2086_p11 }
  0x18   : > { %p2176_p0 = pneg %p2413_p12 }
  0x1a   : > { %p2177_p1 = pnand %p2176_p0, %p2175_p13 }
  0x1c   : > { %p2178_p2 = pneg %p2177_p1 }
  0x1e   : > { %p2183_p4 = pnand %p2181_p3, %p2178_p2 }
  0x20   : > { %2186 = shalt.err (!%p2183_p4)
}
  0x21   : > { %s2187_s14 = scalar_lea.vmem %s361_s22, 256  ;;  %p2195_p9 = scmp.lt.s32.totalorder %s361_s22, %s361_s22 }
  0x22   : > { %p2188_p7 = scmp.ne.s32.totalorder %s361_s22, %s2187_s14  ;;  %p2196_p6 = scmp.lt.s32.totalorder %s2187_s14, %s2187_s14 }
  0x24   : > { %p2190_p8 = pnand %p2188_p7, %p2176_p0  ;;  %p2197_p5 = por %p2196_p6, %p2195_p9 }
  0x26   : > { %p2191_p11 = pneg %p2190_p8 }
  0x28   : > { %p2198_p10 = pnand %p2197_p5, %p2191_p11 }
  0x2a   : > { %2201 = shalt.err (!%p2198_p10)
}
  0x2b   : > { %s2271_s17 = smov 64   ;;  %s2272_s24 = smov 4  }
  0x2c   : > { %2089 = dma.hbm_to_vmem [thread:$0]  (!%p2413_p12), %s2735_s5, 256, %s361_s22, [#allocation3], %s2271_s17, %s2271_s17, %s2272_s24  }
  0x2d   : > { %p2757_p13 = scmp.ne.s32.totalorder %s2755_s20, 0 }
  0x2e   : > { %p2758_p1 = scmp.eq.s32.totalorder (!%p2757_p13), %s2377_s29, 0 }
  0x2f   : > { %404 = sbr.rel (%p2757_p13) target bundleno = 2775 (0xad7), region = 72 }
  0x36   : > { %2247 = dma.done.wait (%p2758_p1), [#allocation3], 256   ;;  %p2759_p0 = pmov %p2758_p1 }
  0x37   : > { %p447_p5 = scmp.lt.s32.totalorder %s2377_s29, 1  ;;  %vm457_vm0 = vcmask 261120   ;;  %v2144_v7 = vld [vmem:[%s2731_s1] sm:$0xff]   ;;  %v2273_v8 = vmov 0.0   ;;  %vm2274_vm1 = vmmov 0   ;;  %v2145_v9 = vld [vmem:[%s2731_s1 + $0x8] sm:$0xff]   ;;  %v568_v31 = vlaneseq }
  0x38   : > { %2249 = vsyncadd (%p2759_p0), [#allocation3], 4294967040  ;;  %1996 = vmatprep.subr.bf16.mxu0 %v2273_v8  ;;  %2000 = vmatprep.mubr.msk.bf16.mxu0 %vm2274_vm1, %v2273_v8  ;;  %v1924_v14 = vld [vmem:[%s2739_s9] ss:$0 sm:$0xff]  ;;  %s2276_s20 = smov 120   ;;  %s2277_s22 = smov 112  }
  0x39   : > { %s448_s27 = scalar_select %p447_p5, %s2377_s29, 1  ;;  %1997 = vmatpush3.bf16.msra.mxu0 %v2144_v7  ;;  %2004 = vmatprep.subr.bf16.mxu1 %v2273_v8  ;;  %v1925_v16 = vld [vmem:[%s2740_s10] ss:$0 sm:$0xff]  ;;  %v2279_v29 = vmov 1983009808   ;;  %v569_v33 = vshrl.u32 %v568_v31, 7 }
  0x3a   : > { %1998 = vmatprep.subr.bf16.mxu0 %v2273_v8  ;;  %2006 = vmatprep.mubr.msk.bf16.mxu1 %vm2274_vm1, %v2273_v8  ;;  %v1926_v20 = vld [vmem:[%s2732_s2] ss:$0 sm:$0xff]  ;;  %s2278_s17 = smov 96   ;;  %v566_v30 = vunpack.c.l.s4 %v2279_v29  ;;  %v2280_v35 = vmov 1934713408   ;;  %vm1007_vm2 = vcmask 64512  }
  0x3b   : > { %s1923_s14 = sshll.u32 %s448_s27, 3  ;;  %v598_v36 = vunpack.c.l.s4 %v2280_v35  ;;  %s2281_s24 = smov 64   ;;  %vm1247_vm3 = vcmask 1043456   ;;  %vm1578_vm4 = vcmask 130048   ;;  %vm1580_vm5 = vcmask 195584  }
  0x3c   : > { %s450_s21 = scalar_lea.vmem %s2730_s0, %s1923_s14  ;;  %v567_v32 = vunpack.c.0.s8 %v566_v30  ;;  %s2282_s15 = smov 16   ;;  %vm1785_vm6 = vcmask 523264  }
  0x3d   : > { %v2444_v0 = vld [vmem:[%s450_s21] sm:$0xff]  ;;  %1999 = vmatpush3.bf16.msra.mxu0 %v2145_v9  ;;  %s2275_s21 = smov 104   ;;  %v599_v43 = vunpack.c.0.s8 %v598_v36  ;;  %s2283_s23 = smov 8  }
  0x3e   : > { %v458_v1 = vsel %vm457_vm0, %v2444_v0, 0.0  ;;  %2010 = vmatprep.subr.bf16.mxu0 %v2273_v8  ;;  %v2495_v39 = vsub.s32 %v567_v32, %v569_v33  ;;  %s444_s16 = sand.u32 1, %s2260_s26   ;;  %p2760_p9 = scmp.ne.s32.totalorder %s2753_s18, 0 }
  0x3f   : > { %459 = vadd.xlane.f32.xlu0 %v458_v1  ;;  %v2505_v49 = vsub.s32 %v599_v43, %v569_v33  ;;  %s1922_s27 = sshll.u32 %s444_s16, 3 }
  0xcc   : > { %v460_v2 = vpop.xlane.xlu0 %459 }
  0xcd   : > { %v462_v3 = vmul.f32 0.03125, %v460_v2 }
  0xcf   : > { %v463_v4 = vsub.f32 %v2444_v0, %v462_v3 }
  0xd1   : > { %v464_v5 = vmul.f32 %v463_v4, %v463_v4 }
  0xd3   : > { %v465_v6 = vsel %vm457_vm0, %v464_v5, 0.0 }
  0xd4   : > { %466 = vadd.xlane.f32.xlu0 %v465_v6 }
 0x161   : > { %v467_v10 = vpop.xlane.xlu0 %466 }
 0x162   : > { %v468_v11 = vmul.f32 0.03125, %v467_v10 }
 0x164   : > { %v469_v12 = vadd.f32 1e-05, %v468_v11 }
 0x166   : > { %2154 = vrsqrt.f32 %v469_v12 }
 0x170   : > { %v2155_v13 = vpop.eup %2154 }
 0x171   : > { %v471_v15 = vmul.f32 %v2155_v13, %v463_v4 }
 0x173   : > { %v478_v17 = vmul.f32 %v1924_v14, %v471_v15 }
 0x175   : > { %v485_v18 = vadd.f32 %v1925_v16, %v478_v17 }
 0x177   : > { %v486_v19 = vpack.c.bf16 %v485_v18, %v485_v18 }
 0x179   : > { %2001 = vmatmul.mubr.msk.bf16.vlgmr.msra.gmra.mrb[0].mxu0 %vm457_vm0, %v486_v19 }
 0x17a   : > { %2012 = vmatprep.mubr.msk.bf16.mxu0 %vm2274_vm1, %v2273_v8 }
 0x24c   : > { %v547_v21 = vpop.f32.mrb[0].mxu0 }
 0x24d   : > { %v2476_v22 = vadd.f32 %v1926_v20, %v547_v21  ;;  %v2002_v23 = vpop.f32.mrb[1].mxu0 }
 0x24e   : > { %v550_v24 = vpop.f32.mrb[2].mxu0 }
 0x24f   : > { %560 = vrot.lane.b32.xlu0 %v2476_v22, %s2275_s21  ;;  %554 = vrot.lane.b32.xlu1 %v2476_v22, %s2276_s20  ;;  %v2003_v25 = vpop.f32.mrb[3].mxu0  ;;  %s2284_s21 = smov 24  }
 0x253   : > { %557 = vrot.lane.b32.xlu1 %v2476_v22, %s2277_s22 }
 0x257   : > { %703 = vrot.lane.b32.xlu1 %v2476_v22, %s2278_s17 }
 0x2c1   : > { %v2482_v26 = vpop.permute.xlu1 %554  ;;  %v2488_v28 = vpop.permute.xlu0 %560 }
 0x2c2   : > { %705 = vrot.lane.b32.xlu1 %v2482_v26, %s2278_s17  ;;  %v579_v40 = vcombine.low %v2482_v26, %v2488_v28  ;;  %v580_v41 = vcombine.high %v2482_v26, %v2488_v28 }
 0x2c4   : > { %v587_v46 = vrot.slane %v579_v40, %v2495_v39  ;;  %v594_v47 = vrot.slane %v580_v41, %v2495_v39 }
 0x2c5   : > { %v2485_v27 = vpop.permute.xlu1 %557 }
 0x2c6   : > { %707 = vrot.lane.b32.xlu1 %v2485_v27, %s2278_s17  ;;  %v563_v37 = vcombine.low %v2476_v22, %v2485_v27  ;;  %v564_v38 = vcombine.high %v2476_v22, %v2485_v27 }
 0x2c8   : > { %v571_v44 = vrot.slane %v563_v37, %v2495_v39  ;;  %v578_v45 = vrot.slane %v564_v38, %v2495_v39 }
 0x2c9   : > { %v704_v34 = vpop.permute.xlu1 %703 }
 0x2ca   : > { %709 = vrot.lane.b32.xlu1 %v2488_v28, %s2278_s17  ;;  %v595_v50 = vcombine.low %v571_v44, %v587_v46  ;;  %v596_v51 = vcombine.high %v571_v44, %v587_v46  ;;  %v611_v52 = vcombine.low %v578_v45, %v594_v47  ;;  %v612_v53 = vcombine.high %v578_v45, %v594_v47 }
 0x2cc   : > { %v603_v59 = vrot.slane %v595_v50, %v2505_v49  ;;  %v610_v60 = vrot.slane %v596_v51, %v2505_v49  ;;  %v619_v61 = vrot.slane %v611_v52, %v2505_v49  ;;  %v626_v62 = vrot.slane %v612_v53, %v2505_v49 }
 0x2ce   : > { %v631_v9 = vcombine.low %v603_v59, %v610_v60  ;;  %v1930_v10 = vcombine.high %v603_v59, %v610_v60  ;;  %v647_v11 = vcombine.low %v619_v61, %v626_v62  ;;  %v1931_v12 = vcombine.high %v619_v61, %v626_v62 }
 0x2d0   : > { %v638_v21 = vrot.slane %v631_v9, %v2495_v39  ;;  %v646_v23 = vrot.slane %v1930_v10, %v2495_v39  ;;  %v654_v24 = vrot.slane %v647_v11, %v2495_v39  ;;  %v662_v25 = vrot.slane %v1931_v12, %v2495_v39 }
 0x2d2   : > { %v663_v40 = vcombine.low %v638_v21, %v646_v23  ;;  %v679_v41 = vcombine.low %v654_v24, %v662_v25 }
 0x2d4   : > { %v687_v50 = vrot.slane %v679_v41, %v2505_v49 }
 0x334   : > { %v706_v42 = vpop.permute.xlu1 %705 }
 0x338   : > { %v708_v48 = vpop.permute.xlu1 %707 }
 0x339   : > { %v715_v54 = vcombine.low %v704_v34, %v708_v48  ;;  %v716_v55 = vcombine.high %v704_v34, %v708_v48  ;;  %v671_v48 = vrot.slane %v663_v40, %v2505_v49 }
 0x33b   : > { %v723_v63 = vrot.slane %v715_v54, %v2495_v39  ;;  %v730_v1 = vrot.slane %v716_v55, %v2495_v39  ;;  %v664_v55 = vcombine.high %v638_v21, %v646_v23 }
 0x33c   : > { %v710_v56 = vpop.permute.xlu1 %709 }
 0x33d   : > { %v731_v57 = vcombine.low %v706_v42, %v710_v56  ;;  %v732_v58 = vcombine.high %v706_v42, %v710_v56  ;;  %v680_v56 = vcombine.high %v654_v24, %v662_v25 }
 0x33f   : > { %v739_v2 = vrot.slane %v731_v57, %v2495_v39  ;;  %v746_v3 = vrot.slane %v732_v58, %v2495_v39  ;;  %v695_v57 = vcombine.low %v671_v48, %v687_v50  ;;  %v696_v58 = vcombine.high %v671_v48, %v687_v50 }
 0x341   : > { %v747_v4 = vcombine.low %v723_v63, %v739_v2  ;;  %v748_v5 = vcombine.high %v723_v63, %v739_v2  ;;  %v763_v6 = vcombine.low %v730_v1, %v746_v3  ;;  %v764_v7 = vcombine.high %v730_v1, %v746_v3 }
 0x342   : > { %v699_v61 = vpack.c.bf16 %v695_v57, %v695_v57  ;;  %v700_v62 = vpack.c.bf16 %v696_v58, %v696_v58  ;;  %v678_v63 = vrot.slane %v664_v55, %v2505_v49  ;;  %v694_v1 = vrot.slane %v680_v56, %v2505_v49 }
 0x343   : > { %v755_v13 = vrot.slane %v747_v4, %v2505_v49  ;;  %v762_v14 = vrot.slane %v748_v5, %v2505_v49  ;;  %v771_v15 = vrot.slane %v763_v6, %v2505_v49  ;;  %v778_v16 = vrot.slane %v764_v7, %v2505_v49 }
 0x344   : > { %v697_v4 = vcombine.low %v678_v63, %v694_v1  ;;  %v698_v5 = vcombine.high %v678_v63, %v694_v1 }
 0x345   : > { %v783_v17 = vcombine.low %v755_v13, %v762_v14  ;;  %v1932_v18 = vcombine.high %v755_v13, %v762_v14  ;;  %v799_v19 = vcombine.low %v771_v15, %v778_v16  ;;  %v1933_v20 = vcombine.high %v771_v15, %v778_v16 }
 0x346   : > { %v701_v6 = vpack.c.bf16 %v697_v4, %v697_v4  ;;  %v702_v7 = vpack.c.bf16 %v698_v5, %v698_v5 }
 0x347   : > { %v790_v29 = vrot.slane %v783_v17, %v2495_v39  ;;  %v798_v30 = vrot.slane %v1932_v18, %v2495_v39  ;;  %v806_v31 = vrot.slane %v799_v19, %v2495_v39  ;;  %v814_v32 = vrot.slane %v1933_v20, %v2495_v39 }
 0x349   : > { %v815_v33 = vcombine.low %v790_v29, %v798_v30  ;;  %v831_v34 = vcombine.low %v806_v31, %v814_v32  ;;  %v816_v35 = vcombine.high %v790_v29, %v798_v30  ;;  %v832_v36 = vcombine.high %v806_v31, %v814_v32 }
 0x34b   : > { %v823_v37 = vrot.slane %v815_v33, %v2505_v49  ;;  %v839_v38 = vrot.slane %v831_v34, %v2505_v49  ;;  %v830_v44 = vrot.slane %v816_v35, %v2505_v49  ;;  %v846_v45 = vrot.slane %v832_v36, %v2505_v49 }
 0x34d   : > { %v847_v42 = vcombine.low %v823_v37, %v839_v38  ;;  %v848_v43 = vcombine.high %v823_v37, %v839_v38  ;;  %v849_v53 = vcombine.low %v830_v44, %v846_v45  ;;  %v850_v54 = vcombine.high %v830_v44, %v846_v45 }
 0x34f   : > { %v851_v46 = vpack.c.bf16 %v847_v42, %v847_v42  ;;  %v852_v47 = vpack.c.bf16 %v848_v43, %v848_v43  ;;  %v853_v59 = vpack.c.bf16 %v849_v53, %v849_v53  ;;  %v854_v60 = vpack.c.bf16 %v850_v54, %v850_v54 }
 0x351   : > { %v1012_v51 = vsel %vm1007_vm2, %v851_v46, 0  ;;  %v1058_v52 = vsel %vm1007_vm2, %v852_v47, 0  ;;  %v1104_v2 = vsel %vm1007_vm2, %v853_v59, 0  ;;  %v1150_v3 = vsel %vm1007_vm2, %v854_v60, 0 }
 0x352   : > { %2005 = vmatpush3.bf16.xpose.msra.mxu1 %v1012_v51  ;;  %2011 = vmatpush3.bf16.xpose.msra.mxu0 %v1058_v52 }
 0x353   : > { %2016 = vmatprep.subr.bf16.mxu1 %v2273_v8  ;;  %2022 = vmatprep.subr.bf16.mxu0 %v2273_v8 }
 0x359   : > { %2007 = vmatmul.mubr.msk.bf16.vlgmr.msra.gmra.mrb[0].mxu1 %vm1007_vm2, %v699_v61  ;;  %2013 = vmatmul.mubr.msk.bf16.vlgmr.msra.gmra.mrb[4].mxu0 %vm1007_vm2, %v700_v62 }
 0x35a   : > { %2017 = vmatpush3.bf16.xpose.msra.mxu1 %v1104_v2  ;;  %2023 = vmatpush3.bf16.xpose.msra.mxu0 %v1150_v3 }
 0x35b   : > { %2018 = vmatprep.mubr.msk.bf16.mxu1 %vm2274_vm1, %v2273_v8  ;;  %2024 = vmatprep.mubr.msk.bf16.mxu0 %vm2274_vm1, %v2273_v8 }
 0x35c   : > { %2028 = vmatprep.subr.bf16.mxu1 %v2273_v8  ;;  %2034 = vmatprep.subr.bf16.mxu0 %v2273_v8 }
 0x361   : > { %2019 = vmatmul.mubr.msk.bf16.vlgmr.msra.gmra.mrb[4].mxu1 %vm1007_vm2, %v701_v6  ;;  %2025 = vmatmul.mubr.msk.bf16.vlgmr.msra.gmra.mrb[8].mxu0 %vm1007_vm2, %v702_v7 }
 0x362   : > { %2030 = vmatprep.mubr.msk.bf16.mxu1 %vm2274_vm1, %v2273_v8  ;;  %2036 = vmatprep.mubr.msk.bf16.mxu0 %vm2274_vm1, %v2273_v8 }
 0x42c   : > { %v1048_v9 = vpop.f32.mrb[0].mxu1  ;;  %v1094_v10 = vpop.f32.mrb[4].mxu0 }
 0x42d   : > { %v1192_v11 = vmul.f32 0.35355338, %v1048_v9  ;;  %v1193_v12 = vmul.f32 0.35355338, %v1094_v10  ;;  %v2008_v13 = vpop.f32.mrb[1].mxu1  ;;  %v2014_v14 = vpop.f32.mrb[5].mxu0 }
 0x42e   : > { %v1051_v15 = vpop.f32.mrb[2].mxu1  ;;  %v1097_v16 = vpop.f32.mrb[6].mxu0 }
 0x42f   : > { %v2009_v17 = vpop.f32.mrb[3].mxu1  ;;  %v2015_v18 = vpop.f32.mrb[7].mxu0  ;;  %v1196_v19 = vsel %vm1007_vm2, %v1192_v11, -inf  ;;  %v1199_v20 = vsel %vm1007_vm2, %v1193_v12, -inf }
 0x430   : > { %1197 = vmax.xlane.f32.xlu1 %v1196_v19  ;;  %1200 = vmax.xlane.f32.xlu0 %v1199_v20 }
 0x434   : > { %v1140_v21 = vpop.f32.mrb[4].mxu1  ;;  %v1186_v23 = vpop.f32.mrb[8].mxu0 }
 0x435   : > { %v1194_v24 = vmul.f32 0.35355338, %v1140_v21  ;;  %v1195_v25 = vmul.f32 0.35355338, %v1186_v23  ;;  %v2020_v29 = vpop.f32.mrb[5].mxu1  ;;  %v2026_v30 = vpop.f32.mrb[9].mxu0 }
 0x436   : > { %v1143_v31 = vpop.f32.mrb[6].mxu1  ;;  %v1189_v32 = vpop.f32.mrb[10].mxu0 }
 0x437   : > { %v2021_v33 = vpop.f32.mrb[7].mxu1  ;;  %v2027_v34 = vpop.f32.mrb[11].mxu0  ;;  %v1202_v35 = vsel %vm1007_vm2, %v1194_v24, -inf  ;;  %v1205_v36 = vsel %vm1007_vm2, %v1195_v25, -inf }
 0x438   : > { %1203 = vmax.xlane.f32.xlu1 %v1202_v35  ;;  %1206 = vmax.xlane.f32.xlu0 %v1205_v36 }
 0x449   : > { %855 = vrot.lane.b32.xlu1 %v2476_v22, %s2281_s24 }
 0x4bd   : > { %v1198_v37 = vpop.xlane.xlu1 %1197  ;;  %v1201_v38 = vpop.xlane.xlu0 %1200 }
 0x4be   : > { %v1208_v40 = vsub.f32 %v1192_v11, %v1198_v37  ;;  %v1209_v41 = vsub.f32 %v1193_v12, %v1201_v38 }
 0x4c0   : > { %v1212_v42 = vmul.f32 1.442695, %v1208_v40  ;;  %v1214_v43 = vmul.f32 1.442695, %v1209_v41 }
 0x4c2   : > { %2156 = vpow2.f32 %v1212_v42 }
 0x4c3   : > { %2158 = vpow2.f32 %v1214_v43 }
 0x4c5   : > { %v1204_v22 = vpop.xlane.xlu1 %1203  ;;  %v1207_v50 = vpop.xlane.xlu0 %1206 }
 0x4c6   : > { %v1210_v48 = vsub.f32 %v1194_v24, %v1204_v22  ;;  %v1211_v51 = vsub.f32 %v1195_v25, %v1207_v50 }
 0x4c8   : > { %v1216_v52 = vmul.f32 1.442695, %v1210_v48  ;;  %v1218_v53 = vmul.f32 1.442695, %v1211_v51 }
 0x4ca   : > { %2160 = vpow2.f32 %v1216_v52 }
 0x4cb   : > { %2162 = vpow2.f32 %v1218_v53 }
 0x4cc   : > { %v2560_v44 = vpop.eup %2156 }
 0x4cd   : > { %v2562_v45 = vpop.eup %2158  ;;  %v1220_v46 = vsel %vm1007_vm2, %v2560_v44, 0.0 }
 0x4ce   : > { %1221 = vadd.xlane.f32.xlu1 %v1220_v46  ;;  %v1223_v47 = vsel %vm1007_vm2, %v2562_v45, 0.0 }
 0x4cf   : > { %1224 = vadd.xlane.f32.xlu0 %v1223_v47 }
 0x4d4   : > { %v2571_v54 = vpop.eup %2160 }
 0x4d5   : > { %v2573_v55 = vpop.eup %2162  ;;  %v1226_v56 = vsel %vm1007_vm2, %v2571_v54, 0.0 }
 0x4df   : > { %859 = vrot.lane.b32.xlu1 %v2485_v27, %s2281_s24  ;;  %v1229_v27 = vsel %vm1007_vm2, %v2573_v55, 0.0 }
 0x4e3   : > { %861 = vrot.lane.b32.xlu1 %v2488_v28, %s2281_s24 }
 0x4e5   : > { %857 = vrot.lane.b32.xlu0 %v2482_v26, %s2281_s24  ;;  %v856_v26 = vpop.permute.xlu1 %855 }
 0x504   : > { %1227 = vadd.xlane.f32.xlu0 %v1226_v56 }
 0x507   : > { %1230 = vadd.xlane.f32.xlu1 %v1229_v27 }
 0x55b   : > { %v1222_v28 = vpop.xlane.xlu1 %1221 }
 0x55c   : > { %v1225_v57 = vpop.xlane.xlu0 %1224  ;;  %2164 = vrcp.f32 %v1222_v28 }
 0x55d   : > { %2166 = vrcp.f32 %v1225_v57 }
 0x55f   : > { %v860_v58 = vpop.permute.xlu1 %859 }
 0x560   : > { %v867_v59 = vcombine.low %v856_v26, %v860_v58  ;;  %v868_v60 = vcombine.high %v856_v26, %v860_v58  ;;  %v858_v61 = vpop.permute.xlu0 %857 }
 0x562   : > { %v875_v2 = vrot.slane %v867_v59, %v2495_v39  ;;  %v882_v3 = vrot.slane %v868_v60, %v2495_v39 }
 0x563   : > { %v862_v62 = vpop.permute.xlu1 %861 }
 0x564   : > { %v883_v63 = vcombine.low %v858_v61, %v862_v62  ;;  %v884_v1 = vcombine.high %v858_v61, %v862_v62  ;;  %v2146_v61 = vld [vmem:[%s2733_s3] sm:$0xff]  }
 0x566   : > { %v891_v4 = vrot.slane %v883_v63, %v2495_v39  ;;  %v898_v5 = vrot.slane %v884_v1, %v2495_v39  ;;  %v2165_v33 = vpop.eup %2164 }
 0x567   : > { %v2167_v36 = vpop.eup %2166  ;;  %v1236_v42 = vmul.f32 %v2165_v33, %v2560_v44 }
 0x568   : > { %v899_v6 = vcombine.low %v875_v2, %v891_v4  ;;  %v900_v7 = vcombine.high %v875_v2, %v891_v4  ;;  %v915_v9 = vcombine.low %v882_v3, %v898_v5  ;;  %v916_v10 = vcombine.high %v882_v3, %v898_v5 }
 0x569   : > { %v1237_v43 = vmul.f32 %v2167_v36, %v2562_v45  ;;  %v1240_v52 = vpack.c.bf16 %v1236_v42, %v1236_v42 }
 0x56a   : > { %v907_v11 = vrot.slane %v899_v6, %v2505_v49  ;;  %v914_v12 = vrot.slane %v900_v7, %v2505_v49  ;;  %v923_v13 = vrot.slane %v915_v9, %v2505_v49  ;;  %v930_v14 = vrot.slane %v916_v10, %v2505_v49 }
 0x56b   : > { %v1241_v53 = vpack.c.bf16 %v1237_v43, %v1237_v43 }
 0x56c   : > { %v935_v15 = vcombine.low %v907_v11, %v914_v12  ;;  %v1934_v16 = vcombine.high %v907_v11, %v914_v12  ;;  %v951_v17 = vcombine.low %v923_v13, %v930_v14  ;;  %v1935_v18 = vcombine.high %v923_v13, %v930_v14 }
 0x56e   : > { %v942_v19 = vrot.slane %v935_v15, %v2495_v39  ;;  %v950_v20 = vrot.slane %v1934_v16, %v2495_v39  ;;  %v958_v21 = vrot.slane %v951_v17, %v2495_v39  ;;  %v966_v23 = vrot.slane %v1935_v18, %v2495_v39 }
 0x570   : > { %v967_v24 = vcombine.low %v942_v19, %v950_v20  ;;  %v968_v25 = vcombine.high %v942_v19, %v950_v20  ;;  %v983_v29 = vcombine.low %v958_v21, %v966_v23  ;;  %v984_v30 = vcombine.high %v958_v21, %v966_v23 }
 0x572   : > { %v975_v31 = vrot.slane %v967_v24, %v2505_v49  ;;  %v982_v32 = vrot.slane %v968_v25, %v2505_v49  ;;  %v991_v34 = vrot.slane %v983_v29, %v2505_v49  ;;  %v998_v35 = vrot.slane %v984_v30, %v2505_v49  ;;  %v2147_v30 = vld [vmem:[%s2733_s3 + $0x8] sm:$0xff]  }
 0x574   : > { %v999_v37 = vcombine.low %v975_v31, %v991_v34  ;;  %v1000_v38 = vcombine.high %v975_v31, %v991_v34  ;;  %v1001_v40 = vcombine.low %v982_v32, %v998_v35  ;;  %v1002_v41 = vcombine.high %v982_v32, %v998_v35 }
 0x576   : > { %v1003_v46 = vpack.c.bf16 %v999_v37, %v999_v37  ;;  %v1004_v47 = vpack.c.bf16 %v1000_v38, %v1000_v38  ;;  %v1005_v50 = vpack.c.bf16 %v1001_v40, %v1001_v40  ;;  %v1006_v51 = vpack.c.bf16 %v1002_v41, %v1002_v41 }
 0x578   : > { %v1249_v22 = vsel %vm1247_vm3, %v1003_v46, 0  ;;  %v1295_v48 = vsel %vm1247_vm3, %v1004_v47, 0  ;;  %v1341_v44 = vsel %vm1247_vm3, %v1005_v50, 0  ;;  %v1387_v45 = vsel %vm1247_vm3, %v1006_v51, 0 }
 0x579   : > { %2029 = vmatpush3.bf16.msra.mxu1 %v1249_v22  ;;  %2035 = vmatpush3.bf16.msra.mxu0 %v1295_v48 }
 0x57a   : > { %2040 = vmatprep.subr.bf16.mxu1 %v2273_v8  ;;  %2046 = vmatprep.subr.bf16.mxu0 %v2273_v8 }
 0x57c   : > { %2031 = vmatmul.mubr.msk.bf16.vlgmr.msra.gmra.mrb[8].mxu1 %vm1007_vm2, %v1240_v52  ;;  %2037 = vmatmul.mubr.msk.bf16.vlgmr.msra.gmra.mrb[12].mxu0 %vm1007_vm2, %v1241_v53 }
 0x57d   : > { %2041 = vmatpush3.bf16.msra.mxu1 %v1341_v44  ;;  %2047 = vmatpush3.bf16.msra.mxu0 %v1387_v45 }
 0x57e   : > { %2042 = vmatprep.mubr.msk.bf16.mxu1 %vm2274_vm1, %v2273_v8  ;;  %2048 = vmatprep.mubr.msk.bf16.mxu0 %vm2274_vm1, %v2273_v8 }
 0x57f   : > { %2052 = vmatprep.subr.bf16.mxu1 %v2273_v8  ;;  %2060 = vmatprep.subr.bf16.mxu0 %v2273_v8 }
 0x591   : > { %v1228_v56 = vpop.xlane.xlu0 %1227 }
 0x592   : > { %2168 = vrcp.f32 %v1228_v56 }
 0x594   : > { %v1231_v27 = vpop.xlane.xlu1 %1230 }
 0x595   : > { %2170 = vrcp.f32 %v1231_v27 }
 0x59c   : > { %v2169_v26 = vpop.eup %2168 }
 0x59d   : > { %v1238_v28 = vmul.f32 %v2169_v26, %v2571_v54 }
 0x59f   : > { %v2171_v57 = vpop.eup %2170  ;;  %v1242_v58 = vpack.c.bf16 %v1238_v28, %v1238_v28 }
 0x5a0   : > { %v1239_v59 = vmul.f32 %v2171_v57, %v2573_v55 }
 0x5a1   : > { %2043 = vmatmul.mubr.msk.bf16.vlgmr.msra.gmra.mrb[12].mxu1 %vm1007_vm2, %v1242_v58 }
 0x5a2   : > { %v1243_v60 = vpack.c.bf16 %v1239_v59, %v1239_v59  ;;  %2056 = vmatprep.mubr.msk.bf16.mxu1 %vm2274_vm1, %v2273_v8  ;;  %2053 = vmatpush3.bf16.msra.mxu1 %v2146_v61 }
 0x5a3   : > { %2054 = vmatprep.subr.bf16.mxu1 %v2273_v8 }
 0x5a4   : > { %2049 = vmatmul.mubr.msk.bf16.vlgmr.msra.gmra.mrb[16].mxu0 %vm1007_vm2, %v1243_v60  ;;  %v1946_v60 = vld [vmem:[%s2734_s4] ss:$0 sm:$0xff] }
 0x5a5   : > { %2064 = vmatprep.mubr.msk.bf16.mxu0 %vm2274_vm1, %v2273_v8 }
 0x5a6   : > { %2055 = vmatpush3.bf16.msra.mxu1 %v2147_v30 }
 0x5a7   : > { %2068 = vmatprep.subr.bf16.mxu1 %v2273_v8 }
 0x64f   : > { %v1285_v54 = vpop.f32.mrb[8].mxu1  ;;  %v1331_v55 = vpop.f32.mrb[12].mxu0 }
 0x650   : > { %v2032_v62 = vpop.f32.mrb[9].mxu1  ;;  %v2038_v63 = vpop.f32.mrb[13].mxu0 }
 0x651   : > { %v1288_v1 = vpop.f32.mrb[10].mxu1  ;;  %v1334_v2 = vpop.f32.mrb[14].mxu0 }
 0x652   : > { %v2033_v3 = vpop.f32.mrb[11].mxu1  ;;  %v2039_v4 = vpop.f32.mrb[15].mxu0 }
 0x674   : > { %v1377_v5 = vpop.f32.mrb[12].mxu1 }
 0x675   : > { %v1429_v6 = vcombine.low %v1285_v54, %v1377_v5  ;;  %v1430_v7 = vcombine.high %v1285_v54, %v1377_v5  ;;  %v2044_v9 = vpop.f32.mrb[13].mxu1 }
 0x676   : > { %v1380_v10 = vpop.f32.mrb[14].mxu1  ;;  %v2148_v9 = vld [vmem:[#allocation2] sm:$0xff]  }
 0x677   : > { %v2045_v11 = vpop.f32.mrb[15].mxu1  ;;  %v1423_v12 = vpop.f32.mrb[16].mxu0  ;;  %v1437_v17 = vrot.slane %v1429_v6, %v2495_v39  ;;  %v1444_v18 = vrot.slane %v1430_v7, %v2495_v39  ;;  %2061 = vmatpush3.bf16.msra.mxu0 %v2148_v9  ;;  %v2149_v10 = vld [vmem:[#allocation2 + $0x8] sm:$0xff]  }
 0x678   : > { %v1445_v13 = vcombine.low %v1331_v55, %v1423_v12  ;;  %v1446_v14 = vcombine.high %v1331_v55, %v1423_v12  ;;  %v2050_v15 = vpop.f32.mrb[17].mxu0  ;;  %2062 = vmatprep.subr.bf16.mxu0 %v2273_v8  ;;  %v2151_v11 = vld [vmem:[%s2737_s7 + $0x8] sm:$0xff]  }
 0x679   : > { %v1426_v16 = vpop.f32.mrb[18].mxu0 }
 0x67a   : > { %v1453_v19 = vrot.slane %v1445_v13, %v2495_v39  ;;  %v1460_v20 = vrot.slane %v1446_v14, %v2495_v39  ;;  %v2051_v21 = vpop.f32.mrb[19].mxu0  ;;  %v1950_v16 = vld [vmem:[%s2741_s11] ss:$0 sm:$0xff] }
 0x67b   : > { %2063 = vmatpush3.bf16.msra.mxu0 %v2149_v10 }
 0x67c   : > { %v1461_v23 = vcombine.low %v1437_v17, %v1453_v19  ;;  %v1462_v24 = vcombine.high %v1437_v17, %v1453_v19  ;;  %v1477_v25 = vcombine.low %v1444_v18, %v1460_v20  ;;  %v1478_v29 = vcombine.high %v1444_v18, %v1460_v20  ;;  %v1951_v18 = vld [vmem:[%s2742_s12] ss:$0 sm:$0xff] }
 0x67e   : > { %v1469_v31 = vrot.slane %v1461_v23, %v2505_v49  ;;  %v1476_v32 = vrot.slane %v1462_v24, %v2505_v49  ;;  %v1485_v33 = vrot.slane %v1477_v25, %v2505_v49  ;;  %v1492_v34 = vrot.slane %v1478_v29, %v2505_v49  ;;  %v2152_v23 = vld [vmem:[%s2737_s7 + $0x10] sm:$0xff]   ;;  %v2153_v24 = vld [vmem:[%s2737_s7 + $0x18] sm:$0xff]   ;;  %v1952_v25 = vld [vmem:[%s2736_s6] ss:$0 sm:$0xff] }
 0x680   : > { %v1497_v35 = vcombine.low %v1469_v31, %v1476_v32  ;;  %v1944_v36 = vcombine.high %v1469_v31, %v1476_v32  ;;  %v1513_v37 = vcombine.low %v1485_v33, %v1492_v34  ;;  %v1945_v38 = vcombine.high %v1485_v33, %v1492_v34 }
 0x682   : > { %v1504_v40 = vrot.slane %v1497_v35, %v2495_v39  ;;  %v1512_v41 = vrot.slane %v1944_v36, %v2495_v39  ;;  %v1520_v42 = vrot.slane %v1513_v37, %v2495_v39  ;;  %v1528_v43 = vrot.slane %v1945_v38, %v2495_v39 }
 0x684   : > { %v1530_v46 = vcombine.high %v1504_v40, %v1512_v41  ;;  %v1546_v47 = vcombine.high %v1520_v42, %v1528_v43  ;;  %v1529_v22 = vcombine.low %v1504_v40, %v1512_v41  ;;  %v1545_v48 = vcombine.low %v1520_v42, %v1528_v43 }
 0x686   : > { %v1544_v50 = vrot.slane %v1530_v46, %v2505_v49  ;;  %v1560_v51 = vrot.slane %v1546_v47, %v2505_v49  ;;  %v1537_v52 = vrot.slane %v1529_v22, %v2505_v49  ;;  %v1553_v53 = vrot.slane %v1545_v48, %v2505_v49 }
 0x688   : > { %v1563_v44 = vcombine.low %v1544_v50, %v1560_v51  ;;  %v1562_v45 = vcombine.high %v1537_v52, %v1553_v53  ;;  %v1564_v56 = vcombine.high %v1544_v50, %v1560_v51  ;;  %v1561_v27 = vcombine.low %v1537_v52, %v1553_v53 }
 0x68a   : > { %1570 = vrot.lane.b32.xlu1 %v1563_v44, %s2282_s15  ;;  %1566 = vrot.lane.b32.xlu0 %v1562_v45, %s2283_s23  ;;  %s1963_s23 = sshll.u32 %s2377_s29, 7  ;;  %s1832_s29 = scalar_lea.sflag [#allocation4], %s444_s16 }
 0x68b   : > { %s2687_s24 = scalar_lea.hbm %s2743_s13, %s1963_s23 }
 0x68e   : > { %1574 = vrot.lane.b32.xlu0 %v1564_v56, %s2284_s21  ;;  %s446_s21 = scalar_lea.vmem [#allocation5], %s1922_s27  ;;  %s2285_s27 = smov [#allocation5]  }
 0x68f   : > { %s1845_s20 = sshll.u32 %s446_s21, 4  ;;  %s2206_s14 = sshll.u32 %s2285_s27, 4  ;;  %s2689_s20 = int_to_ptr.vmem [resolvable:$true] %s1845_s20  ;;  %s2207_s14 = int_to_ptr.vmem [resolvable:$false] %s2206_s14 }
 0x690   : > { %s2202_s30 = scalar_lea.vmem %s2689_s20, 128  ;;  %s2208_s15 = scalar_lea.vmem %s2207_s14, 256 }
 0x691   : > { %p2203_p6 = scmp.ne.s32.totalorder %s2689_s20, %s2202_s30  ;;  %p2209_p2 = scmp.lt.s32.totalorder %s2689_s20, %s2207_s14 }
 0x692   : > { %p2210_p3 = scmp.lt.s32.totalorder %s2208_s15, %s2202_s30 }
 0x693   : > { %p2204_p10 = pnand %p2203_p6, %p2760_p9 }
 0x694   : > { %p2211_p4 = por %p2210_p3, %p2209_p2 }
 0x695   : > { %p2205_p12 = pneg %p2204_p10 }
 0x697   : > { %p2212_p7 = pnand %p2211_p4, %p2205_p12 }
 0x6fc   : > { %v1567_v39 = vpop.permute.xlu0 %1566  ;;  %v1571_v26 = vpop.permute.xlu1 %1570 }
 0x6fd   : > { %v1577_v28 = vsel %vm1007_vm2, %v1561_v27, %v1567_v39 }
 0x6fe   : > { %v1579_v58 = vsel %vm1578_vm4, %v1577_v28, %v1571_v26 }
 0x700   : > { %v1575_v57 = vpop.permute.xlu0 %1574 }
 0x701   : > { %v1581_v59 = vsel %vm1580_vm5, %v1579_v58, %v1575_v57 }
 0x702   : > { %v1582_v49 = vpack.c.bf16 %v1581_v59, %v1581_v59 }
 0x704   : > { %2057 = vmatmul.mubr.msk.bf16.vlgmr.msra.gmra.mrb[16].mxu1 %vm457_vm0, %v1582_v49 }
 0x705   : > { %2076 = vmatprep.mubr.msk.bf16.mxu1 %vm2274_vm1, %v2273_v8 }
 0x7d7   : > { %v1643_v61 = vpop.f32.mrb[16].mxu1 }
 0x7d8   : > { %v1644_v54 = vadd.f32 %v1946_v60, %v1643_v61  ;;  %v2058_v55 = vpop.f32.mrb[17].mxu1 }
 0x7d9   : > { %v1646_v62 = vpop.f32.mrb[18].mxu1 }
 0x7da   : > { %v1649_v63 = vadd.f32 %v1644_v54, %v2444_v0  ;;  %v2059_v1 = vpop.f32.mrb[19].mxu1  ;;  %v2150_v0 = vld [vmem:[%s2737_s7] sm:$0xff]  }
 0x7db   : > { %2069 = vmatpush3.bf16.msra.mxu1 %v2150_v0 }
 0x7dc   : > { %v1650_v2 = vsel %vm457_vm0, %v1649_v63, 0.0  ;;  %2070 = vmatprep.subr.bf16.mxu1 %v2273_v8 }
 0x7dd   : > { %1651 = vadd.xlane.f32.xlu1 %v1650_v2 }
 0x7df   : > { %2071 = vmatpush3.bf16.msra.mxu1 %v2151_v11 }
 0x7e0   : > { %2072 = vmatprep.subr.bf16.mxu1 %v2273_v8 }
 0x7e3   : > { %2073 = vmatpush3.bf16.msra.mxu1 %v2152_v23 }
 0x7e4   : > { %2074 = vmatprep.subr.bf16.mxu1 %v2273_v8  ;;  %v1956_v8 = vld [vmem:[%s2738_s8] ss:$0 sm:$0xff] }
 0x7e7   : > { %2075 = vmatpush3.bf16.msra.mxu1 %v2153_v24 }
 0x86a   : > { %v1652_v3 = vpop.xlane.xlu1 %1651 }
 0x86b   : > { %v1653_v4 = vmul.f32 0.03125, %v1652_v3 }
 0x86d   : > { %v1654_v5 = vsub.f32 %v1649_v63, %v1653_v4 }
 0x86f   : > { %v1655_v6 = vmul.f32 %v1654_v5, %v1654_v5 }
 0x871   : > { %v1656_v7 = vsel %vm457_vm0, %v1655_v6, 0.0 }
 0x872   : > { %1657 = vadd.xlane.f32.xlu0 %v1656_v7 }
 0x8ff   : > { %v1658_v12 = vpop.xlane.xlu0 %1657 }
 0x900   : > { %v1659_v13 = vmul.f32 0.03125, %v1658_v12 }
 0x902   : > { %v1660_v14 = vadd.f32 1e-05, %v1659_v13 }
 0x904   : > { %2172 = vrsqrt.f32 %v1660_v14 }
 0x90e   : > { %v2173_v15 = vpop.eup %2172 }
 0x90f   : > { %v1662_v17 = vmul.f32 %v2173_v15, %v1654_v5 }
 0x911   : > { %v1669_v19 = vmul.f32 %v1950_v16, %v1662_v17 }
 0x913   : > { %v1676_v20 = vadd.f32 %v1951_v18, %v1669_v19 }
 0x915   : > { %v1677_v21 = vpack.c.bf16 %v1676_v20, %v1676_v20 }
 0x917   : > { %2065 = vmatmul.mubr.msk.bf16.vlgmr.msra.gmra.mrb[20].mxu0 %vm457_vm0, %v1677_v21 }
 0x9ea   : > { %v1738_v29 = vpop.f32.mrb[20].mxu0 }
 0x9eb   : > { %v1739_v30 = vadd.f32 %v1952_v25, %v1738_v29  ;;  %v2066_v31 = vpop.f32.mrb[21].mxu0 }
 0x9ec   : > { %v1741_v32 = vpop.f32.mrb[22].mxu0 }
 0x9ed   : > { %v1744_v33 = vmax.f32 %v1739_v30, 0.0  ;;  %v2067_v34 = vpop.f32.mrb[23].mxu0 }
 0x9ef   : > { %v1745_v35 = vpack.c.bf16 %v1744_v33, %v1744_v33 }
 0x9f1   : > { %2077 = vmatmul.mubr.msk.bf16.vlgmr.msra.gmra.mrb[20].mxu1 %vm1785_vm6, %v1745_v35 }
 0xac4   : > { %v1823_v36 = vpop.f32.mrb[20].mxu1 }
 0xac5   : > { %v1824_v37 = vadd.f32 %v1956_v8, %v1823_v36  ;;  %v2078_v38 = vpop.f32.mrb[21].mxu1 }
 0xac6   : > { %v1826_v40 = vpop.f32.mrb[22].mxu1 }
 0xac7   : > { %v1829_v41 = vadd.f32 %v1824_v37, %v1649_v63  ;;  %v2079_v42 = vpop.f32.mrb[23].mxu1 }
 0xac9   : > { %1830 = vst.msk [vmem:[%s446_s21] sm:$0xff] %vm457_vm0, %v1829_v41 }
 0xaca   : > { %2215 = shalt.err (!%p2212_p7)
}
 0xacb   : > { %s2216_s16 = scalar_lea.hbm %s2687_s24, 128  ;;  %s2220_s22 = scalar_lea.hbm %s2743_s13, 256 }
 0xacc   : > { %p2217_p8 = scmp.ne.s32.totalorder %s2687_s24, %s2216_s16  ;;  %p2221_p1 = scmp.lt.u32.totalorder %s2687_s24, %s2743_s13 }
 0xacd   : > { %p2222_p0 = scmp.lt.u32.totalorder %s2220_s22, %s2216_s16  ;;  %p2224_p6 = scmp.lt.u32.totalorder %s2216_s16, %s2687_s24 }
 0xace   : > { %p2218_p11 = pnand %p2217_p8, %p2760_p9 }
 0xacf   : > { %p2223_p5 = por %p2222_p0, %p2221_p1 }
 0xad0   : > { %p2219_p13 = pneg %p2218_p11 }
 0xad1   : > { %p2225_p10 = por %p2224_p6, %p2223_p5 }
 0xad3   : > { %p2226_p12 = pnand %p2225_p10, %p2219_p13 }
 0xad5   : > { %2229 = shalt.err (!%p2226_p12)
}
 0xad6   : > { %2084 = dma.vmem_to_hbm [thread:$0]  (%p2760_p9), %s2689_s20, 128, %s2687_s24, %s1832_s29  }
 0xad7 PF: > { %p2096_p2 = scmp.ge.s32.totalorder %s2268_s28, 2  ;;  %s1857_s30 = sand.u32 1, %s2256_s25  }
 0xad8   : > { %p2761_p3 = scmp.ne.s32.totalorder %s2754_s19, 0  ;;  %s1858_s14 = scalar_lea.sflag [#allocation4], %s1857_s30 }
 0xada   : > { %p2091_p4 = pnand %p2096_p2, %p2761_p3 }
 0xadc   : > { %2251 = dma.done.wait (!%p2091_p4), %s1858_s14, 128  }
 0xadd   : > { %2253 = vsyncadd (!%p2091_p4), %s1858_s14, 4294967168  ;;  %s2762_s28 = sld [smem:[#allocation9_spill]]  ;;  %s2763_s15 = sld [smem:[#allocation8_spill]] }
 0xade   : > { %s2764_s27 = sld [smem:[#allocation10_spill]]  ;;  %s2765_s25 = smov %s2260_s26 }
 0xae3   : > { %p24_p7 = scmp.ge.s32.totalorder %s2762_s28, 4   ;;  %s2766_s26 = smov %s2763_s15 }
 0xae5   :  { %26 = sbr.rel (!%p24_p7) target bundleno = 4 (0x4), region = 112 }
 0xaec   :  { %1863 = vsyncpa [#allocation3], 1 }
 0xaed   :  { %1865 = vsyncpa [#allocation3 + $0x1], 1 }
 0xaee   :  { %1866 = vsyncpa [#allocation4], 1 }
 0xaef   :  { %1868 = vsyncpa [#allocation4 + $0x1], 1 }

</bundles_post_ra>
